<compile_context>
chip_gen: v7x
topology: tpu7x:2x2x1
jax: 0.10.0
libtpu: 0.0.40
codegen_flags: <defaults>
</compile_context>

<pallas_src>
import functools

import jax
import jax.numpy as jnp
from jax.experimental import pallas as pl
from jax.experimental.pallas import tpu as pltpu


def _round_up(x, m):
    return ((x + m - 1) // m) * m


def _cdiv(a, b):
    return (a + b - 1) // b


# ---------------------------------------------------------------------------
# Kernels
# ---------------------------------------------------------------------------
def _fwd_enc_kernel_2d(x_ref, w_ref, b_ref, o_ref):
    # Full-K blocks: one MXU matmul per tile, fused bias + ReLU, f32 accumulate.
    acc = jnp.dot(x_ref[...], w_ref[...], preferred_element_type=jnp.float32)
    o_ref[...] = jnp.maximum(acc + b_ref[...], 0.0).astype(o_ref.dtype)


def _fwd_enc_kernel_3d(x_ref, w_ref, b_ref, o_ref, acc_ref):
    # K-reduction grid axis (last, "arbitrary"): f32 accumulator stays resident
    # in VMEM across k; init at k==0, finalize (bias + ReLU + store) at k==last.
    k = pl.program_id(2)

    @pl.when(k == 0)
    def _():
        acc_ref[...] = jnp.zeros_like(acc_ref)

    acc_ref[...] += jnp.dot(x_ref[...], w_ref[...],
                            preferred_element_type=jnp.float32)

    @pl.when(k == pl.num_programs(2) - 1)
    def _():
        o_ref[...] = jnp.maximum(acc_ref[...] + b_ref[...], 0.0).astype(o_ref.dtype)


# ---------------------------------------------------------------------------
# Planning (generation-aware, cached per layer shape)
# ---------------------------------------------------------------------------
def _vmem_capacity_bytes():
    try:
        return int(pltpu.get_tpu_info().vmem_capacity_bytes)
    except Exception:
        return 64 << 20  # conservative (v7x-sized); only affects tile sizing


@functools.lru_cache(maxsize=None)
def _plan(K, N, compute_itemsize, out_itemsize):
    vmem_cap = _vmem_capacity_bytes()
    if vmem_cap <= (64 << 20):
        # v7x: leave headroom below physical VMEM for compiler scratch / sems.
        tm_target, vmem_budget = 512, 48 << 20
    else:
        # v5e/v6e: 128 MiB VMEM; v6e's roofline knee (~680 flop/B) wants the
        # largest affordable M tile.
        tm_target, vmem_budget = 1024, 112 << 20

    # Sublane multiple for row tiling (bf16 packs 16 rows / vreg, int8/fp8 32).
    sub = max(8, 32 // compute_itemsize, 32 // out_itemsize)
    tm_target = _round_up(tm_target, sub)

    # --- lane-dense N: prefer full 256-wide MXU tiles ---
    tn = 256
    n_pad128 = _round_up(N, 128)
    if n_pad128 % tn == 0:
        n_pad, tn_eff = n_pad128, tn
    elif n_pad128 > tn:
        n_pad, tn_eff = _round_up(n_pad128, tn), tn  # <=128 extra zero lanes
    else:
        n_pad, tn_eff = n_pad128, n_pad128           # tiny N: one 128-wide tile

    # --- K: full-K blocks if they fit the per-step VMEM budget, else split ---
    def step_vmem(tk):
        return (2 * (tm_target * tk + tk * tn_eff) * compute_itemsize  # dbl-buf x, w
                + 2 * tn_eff * 4                                       # dbl-buf bias
                + tm_target * tn_eff * 4                               # f32 accumulator
                + 2 * tm_target * tn_eff * out_itemsize                # dbl-buf out
                + (4 << 20))                                           # headroom

    if step_vmem(K) <= vmem_budget:
        tk_eff, k_pad = K, K
    else:
        tk_eff = 512
        while tk_eff * 2 < K and step_vmem(tk_eff * 2) <= vmem_budget:
            tk_eff *= 2
        k_pad = _round_up(K, tk_eff)
    kt = k_pad // tk_eff

    vmem_limit = int(min(max(step_vmem(tk_eff), 32 << 20), vmem_budget))
    return tm_target, tn_eff, n_pad, tk_eff, kt, k_pad, vmem_limit, sub


# ---------------------------------------------------------------------------
# Per-layer parameter preparation (do once, reuse across calls)
# ---------------------------------------------------------------------------
def prepare_params(w, b, *, compute_dtype=jnp.bfloat16, out_dtype=jnp.float32):
    """Cast / zero-pad weight (K,N) and bias (N,) once for reuse across calls."""
    K, N = w.shape
    c_isz = jnp.dtype(compute_dtype).itemsize
    o_isz = jnp.dtype(out_dtype).itemsize
    _, _, n_pad, _, _, k_pad, _, _ = _plan(K, N, c_isz, o_isz)

    if (k_pad, n_pad) == (K, N):
        w_p = w.astype(compute_dtype)
    else:
        w_p = jnp.zeros((k_pad, n_pad), compute_dtype).at[:K, :N].set(
            w.astype(compute_dtype))
    if n_pad == N:
        b_p = b.astype(jnp.float32).reshape(1, N)
    else:
        b_p = jnp.zeros((1, n_pad), jnp.float32).at[0, :N].set(
            b.astype(jnp.float32))
    return w_p, b_p


# ---------------------------------------------------------------------------
# Forward pass
# ---------------------------------------------------------------------------
def _forward_impl(x, w_p, b_p, K, N, compute_dtype, out_dtype):
    orig_shape = x.shape
    x2 = x.reshape(-1, K)
    M = x2.shape[0]

    c_isz = jnp.dtype(compute_dtype).itemsize
    o_isz = jnp.dtype(out_dtype).itemsize
    (tm_target, tn_eff, n_pad, tk_eff, kt, k_pad,
     vmem_limit, sub) = _plan(K, N, c_isz, o_isz)

    # Balanced M tiling: fix the tile count first so awkward M sizes do not
    # pad a nearly-empty extra tile.
    m_sub = _round_up(max(M, 1), sub)
    mt = max(1, _cdiv(m_sub, tm_target))
    tm_eff = _round_up(_cdiv(m_sub, mt), sub)
    m_pad = mt * tm_eff

    # Cast (and pad only when actually needed) — aligned case is a pure cast.
    if (m_pad, k_pad) == (M, K):
        x_p = x2.astype(compute_dtype)
    else:
        x_p = jnp.zeros((m_pad, k_pad), compute_dtype).at[:M, :K].set(
            x2.astype(compute_dtype))

    nt = n_pad // tn_eff

    # Advisory cost estimate: weight re-streamed once per M tile; x re-streamed
    # per N tile only when K is split (otherwise it stays resident across j).
    flops = 2 * m_pad * n_pad * k_pad
    x_bytes = m_pad * k_pad * c_isz * (nt if kt > 1 else 1)
    w_bytes = k_pad * n_pad * c_isz * mt
    bytes_accessed = x_bytes + w_bytes + n_pad * 4 * mt + m_pad * n_pad * o_isz
    cost = pl.CostEstimate(flops=flops, transcendentals=0,
                           bytes_accessed=bytes_accessed)

    if kt == 1:
        out = pl.pallas_call(
            _fwd_enc_kernel_2d,
            out_shape=jax.ShapeDtypeStruct((m_pad, n_pad), out_dtype),
            grid_spec=pltpu.PrefetchScalarGridSpec(
                num_scalar_prefetch=0,
                grid=(mt, nt),
                in_specs=[
                    pl.BlockSpec((tm_eff, k_pad), lambda i, j: (i, 0)),   # x rows
                    pl.BlockSpec((k_pad, tn_eff), lambda i, j: (0, j)),   # weight cols
                    pl.BlockSpec((1, tn_eff), lambda i, j: (0, j)),       # bias cols
                ],
                out_specs=pl.BlockSpec((tm_eff, tn_eff), lambda i, j: (i, j)),
            ),
            compiler_params=pltpu.CompilerParams(
                dimension_semantics=("parallel", "parallel"),
                vmem_limit_bytes=vmem_limit,
            ),
            cost_estimate=cost,
        )(x_p, w_p, b_p)
    else:
        out = pl.pallas_call(
            _fwd_enc_kernel_3d,
            out_shape=jax.ShapeDtypeStruct((m_pad, n_pad), out_dtype),
            grid_spec=pltpu.PrefetchScalarGridSpec(
                num_scalar_prefetch=0,
                grid=(mt, nt, kt),
                in_specs=[
                    pl.BlockSpec((tm_eff, tk_eff), lambda i, j, k: (i, k)),
                    pl.BlockSpec((tk_eff, tn_eff), lambda i, j, k: (k, j)),
                    pl.BlockSpec((1, tn_eff), lambda i, j, k: (0, j)),
                ],
                out_specs=pl.BlockSpec((tm_eff, tn_eff), lambda i, j, k: (i, j)),
                scratch_shapes=[pltpu.VMEM((tm_eff, tn_eff), jnp.float32)],
            ),
            compiler_params=pltpu.CompilerParams(
                dimension_semantics=("parallel", "parallel", "arbitrary"),
                vmem_limit_bytes=vmem_limit,
            ),
            cost_estimate=cost,
        )(x_p, w_p, b_p)

    if (m_pad, n_pad) != (M, N):
        out = out[:M, :N]
    return out.reshape(orig_shape[:-1] + (N,))


def forward_encoding(x, w, b, *, compute_dtype=jnp.bfloat16, out_dtype=jnp.float32):
    """relu(linear(input.float())): x (..., K), w (K, N), b (N,)."""
    K, N = w.shape
    w_p, b_p = prepare_params(w, b, compute_dtype=compute_dtype, out_dtype=out_dtype)
    return _forward_impl(x, w_p, b_p, K, N, compute_dtype, out_dtype)


class ForwardEncoding:
    """Mirrors the nn.Module: pads/casts weight & bias once, reused every call."""

    def __init__(self, w, b, *, compute_dtype=jnp.bfloat16, out_dtype=jnp.float32):
        self.K, self.N = w.shape
        self.compute_dtype, self.out_dtype = compute_dtype, out_dtype
        self.w_p, self.b_p = prepare_params(
            w, b, compute_dtype=compute_dtype, out_dtype=out_dtype)

    def __call__(self, x):
        return _forward_impl(x, self.w_p, self.b_p, self.K, self.N,
                             self.compute_dtype, self.out_dtype)


if __name__ == "__main__":
    key = jax.random.PRNGKey(0)

    # --- Test 1: small aligned shapes (batch=2, seq=8, in=32, out=32) ---
    batch, seq, in_dim, out_dim = 2, 8, 32, 32
    kx, kw, kb, kx2, kw2, kb2 = jax.random.split(key, 6)

    bound = 1.0 / (in_dim ** 0.5)
    w = jax.random.uniform(kw, (in_dim, out_dim), jnp.float32, -bound, bound)
    b = jax.random.uniform(kb, (out_dim,), jnp.float32, -bound, bound)
    x = jax.random.normal(kx, (batch, seq, in_dim), jnp.float32)

    y = forward_encoding(x, w, b)
    jax.block_until_ready(y)
    assert y.shape == (batch, seq, out_dim)

    # bf16-operand / f32-accumulate reference (tight tolerance)
    ref_bf16 = jnp.maximum(
        jnp.dot(x.reshape(-1, in_dim).astype(jnp.bfloat16), w.astype(jnp.bfloat16),
                preferred_element_type=jnp.float32) + b, 0.0
    ).reshape(batch, seq, out_dim)
    assert jnp.allclose(y, ref_bf16, atol=1e-4, rtol=1e-4)

    # Pure-f32 module math (loose tolerance: bf16 operands are the trade-off)
    ref_f32 = jnp.maximum(x @ w + b, 0.0)
    assert jnp.allclose(y, ref_f32, atol=5e-2, rtol=5e-2)

    # --- Test 2: unaligned M and N (exercises padding + cached-weight class) ---
    b2, s2, in2, out2 = 2, 130, 32, 200
    bound2 = 1.0 / (in2 ** 0.5)
    w2 = jax.random.uniform(kw2, (in2, out2), jnp.float32, -bound2, bound2)
    bias2 = jax.random.uniform(kb2, (out2,), jnp.float32, -bound2, bound2)
    x2 = jax.random.normal(kx2, (b2, s2, in2), jnp.float32)

    layer = ForwardEncoding(w2, bias2)
    y2 = layer(x2)
    jax.block_until_ready(y2)
    assert y2.shape == (b2, s2, out2)
    ref2 = jnp.maximum(x2 @ w2 + bias2, 0.0)
    assert jnp.allclose(y2, ref2, atol=5e-2, rtol=5e-2)

    print("KERNEL_OK")
</pallas_src>

<mosaic_0001>
module attributes {stable_mosaic.version = 11 : i64} {
  func.func @_fwd_enc_kernel_2d(%arg0: i32, %arg1: i32, %arg2: memref<16x32xbf16, #tpu.memory_space<vmem>>, %arg3: memref<32x128xbf16, #tpu.memory_space<vmem>>, %arg4: memref<1x128xf32, #tpu.memory_space<vmem>>, %arg5: memref<16x128xf32, #tpu.memory_space<vmem>>) attributes {dimension_semantics = [#tpu.dimension_semantics<parallel>, #tpu.dimension_semantics<parallel>], iteration_bounds = array<i64: 1, 1>, scalar_prefetch = 0 : i64, scratch_operands = 0 : i64, tpu.core_type = #tpu.core_type<tc>, window_params = [{transform_indices = @transform_0, window_bounds = array<i64: 16, 32>}, {transform_indices = @transform_1, window_bounds = array<i64: 32, 128>}, {transform_indices = @transform_2, window_bounds = array<i64: 1, 128>}, {transform_indices = @transform_3, window_bounds = array<i64: 16, 128>}]} {
    %c0 = arith.constant 0 : index
    %c0_0 = arith.constant 0 : index
    %0 = vector.load %arg2[%c0, %c0_0] : memref<16x32xbf16, #tpu.memory_space<vmem>>, vector<16x32xbf16>
    %c0_1 = arith.constant 0 : index
    %c0_2 = arith.constant 0 : index
    %1 = vector.load %arg3[%c0_1, %c0_2] : memref<32x128xbf16, #tpu.memory_space<vmem>>, vector<32x128xbf16>
    %cst = arith.constant dense<0.000000e+00> : vector<16x128xf32>
    %2 = tpu.matmul %0, %1, %cst {dimension_numbers = #tpu.dot_dimension_numbers<[1], [0], [0], [1], [0, 0, 1, 1], [], []>} : vector<16x32xbf16>, vector<32x128xbf16>, vector<16x128xf32> -> vector<16x128xf32>
    %c0_3 = arith.constant 0 : index
    %c0_4 = arith.constant 0 : index
    %3 = vector.load %arg4[%c0_3, %c0_4] : memref<1x128xf32, #tpu.memory_space<vmem>>, vector<1x128xf32>
    %4 = vector.broadcast %3 : vector<1x128xf32> to vector<16x128xf32>
    %5 = arith.addf %2, %4 : vector<16x128xf32>
    %cst_5 = arith.constant 0.000000e+00 : f32
    %6 = vector.broadcast %cst_5 : f32 to vector<16x128xf32>
    %7 = arith.maximumf %5, %6 : vector<16x128xf32>
    %c0_6 = arith.constant 0 : index
    %c0_7 = arith.constant 0 : index
    %8 = vector.load %arg5[%c0_6, %c0_7] : memref<16x128xf32, #tpu.memory_space<vmem>>, vector<16x128xf32>
    tpu.vector_store %arg5[%c0_6, %c0_7], %7 {strides = array<i32>} : memref<16x128xf32, #tpu.memory_space<vmem>>, vector<16x128xf32>,
    return
  }
  func.func @transform_0(%arg0: i32, %arg1: i32) -> (i32, i32) {
    %c0_i32 = arith.constant 0 : i32
    %c0_i32_0 = arith.constant 0 : i32
    return %arg0, %c0_i32 : i32, i32
  }
  func.func @transform_1(%arg0: i32, %arg1: i32) -> (i32, i32) {
    %c0_i32 = arith.constant 0 : i32
    %c0_i32_0 = arith.constant 0 : i32
    return %c0_i32, %arg1 : i32, i32
  }
  func.func @transform_2(%arg0: i32, %arg1: i32) -> (i32, i32) {
    %c0_i32 = arith.constant 0 : i32
    %c0_i32_0 = arith.constant 0 : i32
    return %c0_i32, %arg1 : i32, i32
  }
  func.func @transform_3(%arg0: i32, %arg1: i32) -> (i32, i32) {
    %c0_i32 = arith.constant 0 : i32
    return %arg0, %arg1 : i32, i32
  }
}

</mosaic_0001>

<bundles_post_ra>
// kernel: tpu_custom_call.1
= control target key start
LH: loop header
LB: loop body
LE: loop exit
PB: predicated region body
PF: predicated region fallthrough
CT: control target
= control target key end

     0   :  { %8 = vsyncpa [#allocation3], 0  ;;  %s309_s0 = inlined_call_operand.hbm [shape: bf16[16,32], index: 0, kind: input, shape index: {}]   ;;  %s310_s1 = inlined_call_operand.hbm [shape: bf16[32,128], index: 1, kind: input, shape index: {}]   ;;  %s311_s2 = inlined_call_operand.vmem [shape: f32[1,128], index: 2, kind: input, shape index: {}]   ;;  %s312_s3 = inlined_call_operand.hbm [shape: f32[16,128], index: 3, kind: output, shape index: {}]  }
   0x1   :  { %9 = vsyncpa [#allocation6], 0 }
   0x2   :  { %10 = vsyncpa [#allocation4], 0  ;;  %s241_s12 = smov [#allocation2]   ;;  %s169_s16 = scalar_lea.hbm %s309_s0, 128 }
   0x3   :  { %s16_s13 = sshll.u32 %s241_s12, 4  ;;  %p170_p0 = scmp.ne.s32.totalorder %s309_s0, %s169_s16  ;;  %s17_s13 = int_to_ptr.vmem [resolvable:$true] %s16_s13 }
   0x4   :  { %p173_p1 = scmp.lt.u32.totalorder %s169_s16, %s309_s0 }
   0x6   :  { %p175_p2 = pnand %p173_p1, %p170_p0 }
   0x8   :  { %178 = shalt.err (!%p175_p2)
}
   0x9   :  { %s179_s21 = scalar_lea.vmem %s17_s13, 128  ;;  %p184_p4 = scmp.lt.s32.totalorder %s17_s13, %s17_s13 }
   0xa   :  { %p180_p3 = scmp.ne.s32.totalorder %s17_s13, %s179_s21  ;;  %p185_p5 = scmp.lt.s32.totalorder %s179_s21, %s179_s21 }
   0xc   :  { %p186_p6 = por %p185_p5, %p184_p4 }
   0xe   :  { %p187_p7 = pnand %p186_p6, %p180_p3 }
  0x10   :  { %190 = shalt.err (!%p187_p7)
}
  0x11   :  { %s242_s22 = smov 64   ;;  %s243_s23 = smov 4  }
  0x12   :  { %22 = dma.hbm_to_vmem [thread:$0]  %s309_s0, 128, %s17_s13, [#allocation3], %s242_s22, %s242_s22, %s243_s23  }
  0x13   :  { %s244_s26 = smov [#allocation5]   ;;  %s191_s30 = scalar_lea.hbm %s310_s1, 256 }
  0x14   :  { %s28_s27 = sshll.u32 %s244_s26, 4  ;;  %p192_p8 = scmp.ne.s32.totalorder %s310_s1, %s191_s30  ;;  %s29_s27 = int_to_ptr.vmem [resolvable:$true] %s28_s27 }
  0x15   :  { %p195_p9 = scmp.lt.u32.totalorder %s191_s30, %s310_s1 }
  0x17   :  { %p197_p10 = pnand %p195_p9, %p192_p8 }
  0x19   :  { %200 = shalt.err (!%p197_p10)
}
  0x1a   :  { %s201_s8 = scalar_lea.vmem %s29_s27, 256  ;;  %p206_p12 = scmp.lt.s32.totalorder %s29_s27, %s29_s27 }
  0x1b   :  { %p202_p11 = scmp.ne.s32.totalorder %s29_s27, %s201_s8  ;;  %p207_p13 = scmp.lt.s32.totalorder %s201_s8, %s201_s8 }
  0x1d   :  { %p208_p0 = por %p207_p13, %p206_p12 }
  0x1f   :  { %p209_p1 = pnand %p208_p0, %p202_p11 }
  0x21   :  { %212 = shalt.err (!%p209_p1)
}
  0x22   :  { %34 = dma.hbm_to_vmem [thread:$0]  %s310_s1, 256, %s29_s27, [#allocation6], %s242_s22, %s242_s22, %s243_s23  }
  0x23   :  { %235 = dma.done.wait [#allocation3], 128  }
  0x24   :  { %236 = vsyncadd [#allocation3], 4294967168 }
  0x25   :  { %237 = dma.done.wait [#allocation6], 256  }
  0x26   :  { %238 = vsyncadd [#allocation6], 4294967040  ;;  %v245_v0 = vmov 0.0   ;;  %vm246_vm0 = vmmov 0   ;;  %v166_v1 = vld [vmem:[#allocation5] sm:$0xff]   ;;  %v167_v2 = vld [vmem:[#allocation5 + $0x8] sm:$0xff]  }
  0x27   :  { %149 = vmatprep.subr.bf16.mxu0 %v245_v0  ;;  %153 = vmatprep.mubr.msk.bf16.mxu0 %vm246_vm0, %v245_v0  ;;  %v168_v3 = vld [vmem:[#allocation2] sm:$0xff]   ;;  %vm74_vm1 = vcmask 261120   ;;  %s247_s1 = smov [#allocation7]  }
  0x28   :  { %150 = vmatpush3.bf16.msra.mxu0 %v166_v1  ;;  %v141_v4 = vld [vmem:[%s311_s2] ss:$0 sm:$0xff]  ;;  %s128_s12 = sshll.u32 %s247_s1, 4  ;;  %s129_s12 = int_to_ptr.vmem [resolvable:$true] %s128_s12 }
  0x29   :  { %151 = vmatprep.subr.bf16.mxu0 %v245_v0  ;;  %s213_s13 = scalar_lea.vmem %s129_s12, 256  ;;  %p218_p3 = scmp.lt.s32.totalorder %s129_s12, %s129_s12 }
  0x2a   :  { %p214_p2 = scmp.ne.s32.totalorder %s129_s12, %s213_s13  ;;  %p219_p4 = scmp.lt.s32.totalorder %s213_s13, %s213_s13 }
  0x2c   :  { %152 = vmatpush3.bf16.msra.mxu0 %v167_v2  ;;  %p220_p5 = por %p219_p4, %p218_p3 }
  0x2e   :  { %p221_p6 = pnand %p220_p5, %p214_p2 }
  0x2f   :  { %154 = vmatmul.mubr.msk.bf16.vlgmr.msra.gmra.mrb[0].mxu0 %vm74_vm1, %v168_v3 }
 0x102   :  { %v112_v5 = vpop.f32.mrb[0].mxu0 }
 0x103   :  { %v113_v6 = vadd.f32 %v141_v4, %v112_v5  ;;  %v155_v7 = vpop.f32.mrb[1].mxu0 }
 0x104   :  { %v115_v8 = vpop.f32.mrb[2].mxu0 }
 0x105   :  { %v119_v9 = vmax.f32 %v113_v6, 0.0  ;;  %v116_v10 = vadd.f32 %v141_v4, %v115_v8  ;;  %v156_v11 = vpop.f32.mrb[3].mxu0 }
 0x107   :  { %121 = vst [vmem:[#allocation7] sm:$0xff] %v119_v9  ;;  %v120_v12 = vmax.f32 %v116_v10, 0.0 }
 0x109   :  { %122 = vst [vmem:[#allocation7 + $0x8] sm:$0xff] %v120_v12 }
 0x10a   :  { %224 = shalt.err (!%p221_p6)
}
 0x10b   :  { %s225_s15 = scalar_lea.hbm %s312_s3, 256 }
 0x10c   :  { %p226_p7 = scmp.ne.s32.totalorder %s312_s3, %s225_s15  ;;  %p229_p8 = scmp.lt.u32.totalorder %s225_s15, %s312_s3 }
 0x10e   :  { %p231_p9 = pnand %p229_p8, %p226_p7 }
 0x110   :  { %234 = shalt.err (!%p231_p9)
}
 0x111   :  { %s248_s20 = smov 128   ;;  %s249_s21 = smov 8  }
 0x112   :  { %134 = dma.vmem_to_hbm [thread:$0]  %s129_s12, 256, %s312_s3, [#allocation4], %s248_s20, %s248_s20, %s249_s21  }
 0x113   :  { %239 = dma.done.wait [#allocation4], 256  }
 0x114   :  { %240 = vsyncadd [#allocation4], 4294967040 }
 0x115   :  { %138 = vsyncpa [#allocation3], 1 }
 0x116   :  { %139 = vsyncpa [#allocation6], 1 }
 0x117   :  { %140 = vsyncpa [#allocation4], 1 }

</bundles_post_ra>
